<compile_context>
chip_gen: v6e
topology: v6e:2x2x1
jax: 0.10.0
libtpu: 0.0.40
codegen_flags: <defaults>
</compile_context>

<pallas_src>
import jax
import jax.numpy as jnp
from jax.experimental import pallas as pl
from jax.experimental.pallas import tpu as pltpu


def _sigmoid_kernel(x_ref, o_ref):
    # Elementwise sigmoid on the whole VMEM tile; compute in f32, cast back.
    x = x_ref[...].astype(jnp.float32)
    o_ref[...] = jax.nn.sigmoid(x).astype(o_ref.dtype)


# Wide lane-dense last dim (8 vregs per row) and ~2 MiB f32 row tiles.
_LANE = 1024
_MAX_TILE_R = 512  # 512 x 1024 x 4B = 2 MiB per f32 tile


def tudui_forward(x):
    """Applies sigmoid elementwise, matching Tudui.forward semantics."""
    orig_shape = x.shape
    orig_dtype = x.dtype
    total = x.size

    # ---- Flatten + pad to an (8,128)-aligned lane-dense slab ----------------
    flat = x.reshape(-1)
    rows = -(-total // _LANE)  # ceil-div

    if rows > _MAX_TILE_R:
        tile_r = _MAX_TILE_R
        rows_padded = -(-rows // tile_r) * tile_r  # whole tiles only
    else:
        rows_padded = max(8, -(-rows // 8) * 8)    # at least one full vreg row block
        tile_r = rows_padded                       # single tile, still (8,128)-aligned

    padded_total = rows_padded * _LANE
    if padded_total != total:
        flat = jnp.pad(flat, (0, padded_total - total))
    slab = flat.reshape(rows_padded, _LANE)

    grid_r = rows_padded // tile_r

    # ---- Tiled, pipelined elementwise kernel --------------------------------
    out = pl.pallas_call(
        _sigmoid_kernel,
        out_shape=jax.ShapeDtypeStruct((rows_padded, _LANE), orig_dtype),
        grid_spec=pltpu.PrefetchScalarGridSpec(
            num_scalar_prefetch=0,
            grid=(grid_r,),
            in_specs=[pl.BlockSpec((tile_r, _LANE), lambda i: (i, 0))],
            out_specs=pl.BlockSpec((tile_r, _LANE), lambda i: (i, 0)),
        ),
        compiler_params=pltpu.CompilerParams(
            # "parallel": shard row tiles across TensorCores on v7x; neutral on
            # single-TC v5e/v6e.
            dimension_semantics=("parallel",),
        ),
    )(slab)

    # ---- Strip padding and restore original layout --------------------------
    return out.reshape(-1)[:total].reshape(orig_shape)


if __name__ == "__main__":
    key = jax.random.PRNGKey(0)
    # Small NCHW input consistent with the module's usage.
    x = jax.random.normal(key, (2, 4, 16, 16), dtype=jnp.float32)

    y = tudui_forward(x)
    jax.block_until_ready(y)

    # Reference check against plain JAX sigmoid.
    y_ref = jax.nn.sigmoid(x)
    assert y.shape == x.shape and y.dtype == x.dtype
    assert jnp.allclose(y, y_ref, atol=1e-6), "mismatch vs reference sigmoid"

    print("KERNEL_OK")
</pallas_src>

<mosaic_0001>
module attributes {stable_mosaic.version = 11 : i64} {
  func.func @_sigmoid_kernel(%arg0: i32, %arg1: memref<8x1024xf32, #tpu.memory_space<vmem>>, %arg2: memref<8x1024xf32, #tpu.memory_space<vmem>>) attributes {dimension_semantics = [#tpu.dimension_semantics<parallel>], iteration_bounds = array<i64: 1>, scalar_prefetch = 0 : i64, scratch_operands = 0 : i64, tpu.core_type = #tpu.core_type<tc>, window_params = [{transform_indices = @transform_0, window_bounds = array<i64: 8, 1024>}, {transform_indices = @transform_1, window_bounds = array<i64: 8, 1024>}]} {
    %c0 = arith.constant 0 : index
    %c0_0 = arith.constant 0 : index
    %0 = vector.load %arg1[%c0, %c0_0] : memref<8x1024xf32, #tpu.memory_space<vmem>>, vector<8x1024xf32>
    %1 = arith.negf %0 : vector<8x1024xf32>
    %2 = math.exp %1 : vector<8x1024xf32>
    %cst = arith.constant 1.000000e+00 : f32
    %3 = vector.broadcast %cst : f32 to vector<8x1024xf32>
    %4 = arith.addf %3, %2 : vector<8x1024xf32>
    %5 = arith.divf %3, %4 : vector<8x1024xf32>
    %c0_1 = arith.constant 0 : index
    %c0_2 = arith.constant 0 : index
    %6 = vector.load %arg2[%c0_1, %c0_2] : memref<8x1024xf32, #tpu.memory_space<vmem>>, vector<8x1024xf32>
    tpu.vector_store %arg2[%c0_1, %c0_2], %5 {strides = array<i32>} : memref<8x1024xf32, #tpu.memory_space<vmem>>, vector<8x1024xf32>,
    return
  }
  func.func @transform_0(%arg0: i32) -> (i32, i32) {
    %c0_i32 = arith.constant 0 : i32
    %c0_i32_0 = arith.constant 0 : i32
    return %arg0, %c0_i32 : i32, i32
  }
  func.func @transform_1(%arg0: i32) -> (i32, i32) {
    %c0_i32 = arith.constant 0 : i32
    %c0_i32_0 = arith.constant 0 : i32
    return %arg0, %c0_i32 : i32, i32
  }
}

</mosaic_0001>

<bundles_post_ra>
// kernel: tpu_custom_call.1
= control target key start
LH: loop header
LB: loop body
LE: loop exit
PB: predicated region body
PF: predicated region fallthrough
CT: control target
= control target key end

     0   :  { %6 = vsyncpa [#allocation3], 0  ;;  %s204_s0 = inlined_call_operand.hbm [shape: f32[8,1024], index: 0, kind: input, shape index: {}]   ;;  %s205_s1 = inlined_call_operand.hbm [shape: f32[8,1024], index: 1, kind: output, shape index: {}]  }
   0x1   :  { %7 = vsyncpa [#allocation4], 0  ;;  %s186_s6 = smov [#allocation2]  }
   0x2   :  { %s14_s7 = sshll.u32 %s186_s6, 4  ;;  %s15_s7 = int_to_ptr.vmem [resolvable:$true] %s14_s7 }
   0x3   :  { %s150_s8 = scalar_lea.vmem %s15_s7, 1024  ;;  %p155_p1 = scmp.lt.s32.totalorder %s15_s7, %s15_s7 }
   0x4   :  { %p151_p0 = scmp.ne.s32.totalorder %s15_s7, %s150_s8  ;;  %p156_p2 = scmp.lt.s32.totalorder %s150_s8, %s150_s8 }
   0x6   :  { %p157_p3 = por %p156_p2, %p155_p1 }
   0x8   :  { %p158_p4 = pnand %p157_p3, %p151_p0 }
   0xa   :  { %161 = shalt.err (!%p158_p4)
}
   0xb   :  { %17 = dma.hbm_to_vmem [thread:$0]  %s204_s0, 1024, %s15_s7, [#allocation3]  }
   0xc   :  { %182 = dma.done.wait [#allocation3], 1024  }
   0xd   :  { %183 = vsyncadd [#allocation3], 4294966272  ;;  %v21_v0 = vld [vmem:[#allocation2] sm:$0xff]  ;;  %v22_v1 = vld [vmem:[#allocation2 + $0x8] sm:$0xff]  ;;  %s187_s0 = smov [#allocation5]  }
   0xe   :  { %v23_v2 = vld [vmem:[#allocation2 + $0x10] sm:$0xff]  ;;  %v100_v3 = vmul.f32 -1.442695, %v21_v0  ;;  %v101_v4 = vmul.f32 -1.442695, %v22_v1  ;;  %v24_v6 = vld [vmem:[#allocation2 + $0x18] sm:$0xff] }
   0xf   :  { %v102_v5 = vmul.f32 -1.442695, %v23_v2  ;;  %v25_v7 = vld [vmem:[#allocation2 + $0x20] sm:$0xff]  ;;  %v26_v8 = vld [vmem:[#allocation2 + $0x28] sm:$0xff]  ;;  %v103_v9 = vmul.f32 -1.442695, %v24_v6 }
  0x10   :  { %110 = vpow2.f32 %v100_v3  ;;  %v104_v10 = vmul.f32 -1.442695, %v25_v7  ;;  %v105_v11 = vmul.f32 -1.442695, %v26_v8  ;;  %v27_v12 = vld [vmem:[#allocation2 + $0x30] sm:$0xff]  ;;  %v28_v13 = vld [vmem:[#allocation2 + $0x38] sm:$0xff] }
  0x11   :  { %112 = vpow2.f32 %v101_v4  ;;  %v106_v14 = vmul.f32 -1.442695, %v27_v12  ;;  %v107_v15 = vmul.f32 -1.442695, %v28_v13  ;;  %s91_s11 = sshll.u32 %s187_s0, 4  ;;  %s92_s11 = int_to_ptr.vmem [resolvable:$true] %s91_s11 }
  0x12   :  { %114 = vpow2.f32 %v102_v5  ;;  %s162_s12 = scalar_lea.vmem %s92_s11, 1024  ;;  %p167_p6 = scmp.lt.s32.totalorder %s92_s11, %s92_s11 }
  0x13   :  { %116 = vpow2.f32 %v103_v9  ;;  %p163_p5 = scmp.ne.s32.totalorder %s92_s11, %s162_s12  ;;  %p168_p7 = scmp.lt.s32.totalorder %s162_s12, %s162_s12 }
  0x14   :  { %118 = vpow2.f32 %v104_v10 }
  0x15   :  { %120 = vpow2.f32 %v105_v11  ;;  %p169_p8 = por %p168_p7, %p167_p6 }
  0x16   :  { %122 = vpow2.f32 %v106_v14 }
  0x17   :  { %124 = vpow2.f32 %v107_v15  ;;  %p170_p9 = pnand %p169_p8, %p163_p5 }
  0x1d   :  { %v111_v16 = vpop.eup %110 }
  0x1e   :  { %v113_v17 = vpop.eup %112  ;;  %v53_v18 = vadd.f32 1.0, %v111_v16 }
  0x1f   :  { %v115_v19 = vpop.eup %114  ;;  %v54_v20 = vadd.f32 1.0, %v113_v17 }
  0x20   :  { %v117_v21 = vpop.eup %116  ;;  %126 = vrcp.f32 %v53_v18  ;;  %v55_v22 = vadd.f32 1.0, %v115_v19 }
  0x21   :  { %v119_v23 = vpop.eup %118  ;;  %128 = vrcp.f32 %v54_v20  ;;  %v56_v24 = vadd.f32 1.0, %v117_v21 }
  0x22   :  { %v121_v25 = vpop.eup %120  ;;  %130 = vrcp.f32 %v55_v22  ;;  %v57_v26 = vadd.f32 1.0, %v119_v23 }
  0x23   :  { %v123_v27 = vpop.eup %122  ;;  %132 = vrcp.f32 %v56_v24  ;;  %v58_v28 = vadd.f32 1.0, %v121_v25 }
  0x24   :  { %v125_v29 = vpop.eup %124  ;;  %134 = vrcp.f32 %v57_v26  ;;  %v59_v30 = vadd.f32 1.0, %v123_v27 }
  0x25   :  { %136 = vrcp.f32 %v58_v28  ;;  %v60_v31 = vadd.f32 1.0, %v125_v29 }
  0x26   :  { %138 = vrcp.f32 %v59_v30 }
  0x27   :  { %140 = vrcp.f32 %v60_v31 }
  0x2d   :  { %v127_v32 = vpop.eup %126 }
  0x2e   :  { %v129_v33 = vpop.eup %128  ;;  %77 = vst [vmem:[#allocation5] sm:$0xff] %v127_v32 }
  0x2f   :  { %v131_v34 = vpop.eup %130  ;;  %78 = vst [vmem:[#allocation5 + $0x8] sm:$0xff] %v129_v33 }
  0x30   :  { %v133_v35 = vpop.eup %132  ;;  %79 = vst [vmem:[#allocation5 + $0x10] sm:$0xff] %v131_v34 }
  0x31   :  { %v135_v36 = vpop.eup %134  ;;  %80 = vst [vmem:[#allocation5 + $0x18] sm:$0xff] %v133_v35 }
  0x32   :  { %v137_v37 = vpop.eup %136  ;;  %81 = vst [vmem:[#allocation5 + $0x20] sm:$0xff] %v135_v36 }
  0x33   :  { %v139_v38 = vpop.eup %138  ;;  %82 = vst [vmem:[#allocation5 + $0x28] sm:$0xff] %v137_v37 }
  0x34   :  { %v141_v39 = vpop.eup %140  ;;  %83 = vst [vmem:[#allocation5 + $0x30] sm:$0xff] %v139_v38 }
  0x35   :  { %84 = vst [vmem:[#allocation5 + $0x38] sm:$0xff] %v141_v39 }
  0x36   :  { %173 = shalt.err (!%p170_p9)
}
  0x37   :  { %94 = dma.vmem_to_hbm [thread:$0]  %s92_s11, 1024, %s205_s1, [#allocation4]  }
  0x38   :  { %184 = dma.done.wait [#allocation4], 1024  }
  0x39   :  { %185 = vsyncadd [#allocation4], 4294966272 }
  0x3a   :  { %98 = vsyncpa [#allocation3], 1 }
  0x3b   :  { %99 = vsyncpa [#allocation4], 1 }

</bundles_post_ra>
